<compile_context>
chip_gen: v7x
topology: tpu7x:2x2x1
jax: 0.10.0
libtpu: 0.0.40
codegen_flags: <defaults>
</compile_context>

<pallas_src>
import functools

import jax
import jax.numpy as jnp
import numpy as np
from jax import lax
from jax.experimental import pallas as pl
from jax.experimental.pallas import tpu as pltpu


def _round_up(x, m):
    return (x + m - 1) // m * m


def _visual_attention_kernel(enc_ref, we_ref, dec_att_ref, wf_ref,
                             ctx_ref, alpha_ref, *, p_valid):
    TB, P_pad, E = enc_ref.shape
    A = we_ref.shape[1]

    enc3 = enc_ref[...]                                    # (TB, P_pad, E) mxu dtype
    enc2 = enc3.reshape(TB * P_pad, E)                     # leading-dim merge only

    # Encoder projection: one MXU matmul for the whole batch tile, f32 acc.
    enc_att = jnp.dot(enc2, we_ref[...],
                      preferred_element_type=jnp.float32)  # (TB*P_pad, A) f32
    enc_att = enc_att.reshape(TB, P_pad, A)

    # Host-hoisted decoder projection (both biases folded in), broadcast over
    # pixels, then ReLU.
    h = jnp.maximum(enc_att + dec_att_ref[...][:, None, :], 0.0)     # (TB,P_pad,A)

    # full_att: VPU broadcast-multiply + lane reduce over A.  keepdims keeps P
    # on sublanes for the softmax / context path.  b_f (softmax-invariant) is
    # dropped.
    att = jnp.sum(h * wf_ref[...], axis=-1, keepdims=True)           # (TB,P_pad,1)

    # Softmax over the (possibly sublane-padded) pixel axis.
    if p_valid < P_pad:
        pix = lax.broadcasted_iota(jnp.int32, (TB, P_pad, 1), 1)
        valid = pix < p_valid
        m = jnp.max(jnp.where(valid, att, -jnp.inf), axis=1, keepdims=True)
        e = jnp.where(valid, jnp.exp(att - m), 0.0)
    else:
        m = jnp.max(att, axis=1, keepdims=True)
        e = jnp.exp(att - m)
    s = jnp.sum(e, axis=1, keepdims=True)                   # (TB, 1, 1)
    alpha3 = e * pl.reciprocal(s, approx=True)              # (TB, P_pad, 1)

    # context[b, :] = sum_p alpha[b, p] * enc[b, p, :]
    # VPU multiply (bf16 promoted to f32) + sublane reduce; P already on
    # sublanes, so no relayout here.
    ctx = jnp.sum(alpha3 * enc3, axis=1)                    # (TB, E) f32

    ctx_ref[...] = ctx.astype(ctx_ref.dtype)
    # Single lane-major relayout for the alpha output store.
    alpha_ref[...] = alpha3[..., 0].astype(alpha_ref.dtype)


def _pick_batch_tile(B, P_pad, E, A, enc_itemsize, vmem_budget_bytes):
    """Largest multiple-of-8 batch tile whose working set fits the VMEM budget,
    keeping >= 2 grid steps (for the v7x megacore) when B allows it."""
    if B <= 8:
        return B
    per_row = (2 * P_pad * E * enc_itemsize        # double-buffered enc DMA block
               + 2 * P_pad * A * 4                 # enc_att / h f32 temporaries
               + 8 * (E + A + P_pad) * 4)          # small vectors + slack
    tb = vmem_budget_bytes // max(per_row, 1)
    tb = max(8, min(128, (tb // 8) * 8))
    tb = min(tb, _round_up(B, 8))                  # never pad batch past need
    if B >= 16:
        tb = min(tb, max(8, ((B // 2) // 8) * 8))  # >= 2 grid steps
    return tb


def visual_attention(encoder_features, decoder_hidden, params, *,
                     mxu_dtype=jnp.bfloat16, block_b=None,
                     vmem_budget_bytes=32 << 20, vmem_limit_bytes=None):
    """encoder_features: (B, P, E) f32; decoder_hidden: (B, D) f32.

    Returns (context (B, E), alpha (B, P)).
    mxu_dtype=jnp.bfloat16 (default) halves enc DMA and uses the fast MXU path
    on v5e/v6e/v7x while keeping f32 accumulation; pass jnp.float32 for exact
    f32 matmul inputs.
    """
    B, P, E = encoder_features.shape
    A = params["we_t"].shape[1]
    f32 = jnp.float32

    # Tiny decoder projection (M=B) hoisted to plain XLA; both biases folded in.
    dec_att = (decoder_hidden.astype(f32) @ params["wd_t"].astype(f32)
               + (params["be"] + params["bd"]).astype(f32))           # (B, A) f32

    # Only the sublane dim (P) of the enc block needs rounding to 8; every lane
    # dim (E, A, P for alpha) keeps its true size via the full-dim exception.
    P_pad = _round_up(P, 8)

    enc_itemsize = jnp.dtype(mxu_dtype).itemsize
    if block_b is None:
        TB = _pick_batch_tile(B, P_pad, E, A, enc_itemsize, vmem_budget_bytes)
    else:
        TB = B if B <= 8 else max(8, min((block_b // 8) * 8, _round_up(B, 8)))
    B_pad = _round_up(B, TB)
    nb = B_pad // TB

    # Host-side cast to the MXU input dtype (halves enc HBM traffic for bf16);
    # the pads are no-ops when P and B are already aligned.
    enc_p = jnp.pad(encoder_features,
                    ((0, B_pad - B), (0, P_pad - P), (0, 0))).astype(mxu_dtype)
    dec_att_p = jnp.pad(dec_att, ((0, B_pad - B), (0, 0)))             # (B_pad, A) f32
    we_p = params["we_t"].astype(mxu_dtype)                            # (E, A)
    wf_p = params["wf_t"].astype(f32).reshape(1, A)                    # (1, A)

    # NOTE: W_e is loop-invariant (constant index_map); for very large E*A one
    # would single-buffer it via a manual copy under pl.when(program_id == 0).
    grid_spec = pltpu.PrefetchScalarGridSpec(
        num_scalar_prefetch=0,
        grid=(nb,),
        in_specs=[
            pl.BlockSpec((TB, P_pad, E), lambda b: (b, 0, 0)),   # encoder feats
            pl.BlockSpec((E, A), lambda b: (0, 0)),              # W_e^T (loop-invariant)
            pl.BlockSpec((TB, A), lambda b: (b, 0)),             # hoisted dec_att
            pl.BlockSpec((1, A), lambda b: (0, 0)),              # W_f row
        ],
        out_specs=[
            pl.BlockSpec((TB, E), lambda b: (b, 0)),             # context
            pl.BlockSpec((TB, P_pad), lambda b: (b, 0)),         # alpha
        ],
    )

    cp_kwargs = dict(dimension_semantics=("parallel",))
    if vmem_limit_bytes is not None:
        cp_kwargs["vmem_limit_bytes"] = int(vmem_limit_bytes)

    kernel = functools.partial(_visual_attention_kernel, p_valid=P)

    ctx_p, alpha_p = pl.pallas_call(
        kernel,
        out_shape=(jax.ShapeDtypeStruct((B_pad, E), f32),
                   jax.ShapeDtypeStruct((B_pad, P_pad), f32)),
        grid_spec=grid_spec,
        compiler_params=pltpu.CompilerParams(**cp_kwargs),
    )(enc_p, we_p, dec_att_p, wf_p)

    return ctx_p[:B], alpha_p[:B, :P]


def make_params(key, encoder_dim, decoder_dim, attention_dim):
    """Deterministic synthetic init (PyTorch-Linear-like uniform fan-in scaling)."""
    k = jax.random.split(key, 6)

    def lin(kw, kb, fan_in, fan_out):
        bound = 1.0 / np.sqrt(fan_in)
        w = jax.random.uniform(kw, (fan_in, fan_out), jnp.float32, -bound, bound)
        b = jax.random.uniform(kb, (1, fan_out), jnp.float32, -bound, bound)
        return w, b

    we_t, be = lin(k[0], k[1], encoder_dim, attention_dim)
    wd_t, bd = lin(k[2], k[3], decoder_dim, attention_dim)
    wf_t, bf = lin(k[4], k[5], attention_dim, 1)
    return {"we_t": we_t, "be": be, "wd_t": wd_t, "bd": bd,
            "wf_t": wf_t, "bf": bf}


def visual_attention_ref(encoder_features, decoder_hidden, p):
    """Plain-JAX reference mirroring the PyTorch forward."""
    enc_att = encoder_features @ p["we_t"] + p["be"]                # (B,P,A)
    dec_att = (decoder_hidden @ p["wd_t"] + p["bd"])[:, None, :]    # (B,1,A)
    att = (jnp.maximum(enc_att + dec_att, 0.0) @ p["wf_t"] + p["bf"])[..., 0]
    alpha = jax.nn.softmax(att, axis=1)                             # (B,P)
    context = jnp.einsum("bp,bpe->be", alpha, encoder_features)     # (B,E)
    return context, alpha


if __name__ == "__main__":
    B, P = 2, 16            # batch, num_pixels
    E, D, A = 32, 32, 32    # encoder_dim, decoder_dim, attention_dim

    key = jax.random.PRNGKey(0)
    k_enc, k_dec, k_par = jax.random.split(key, 3)

    encoder_features = jax.random.normal(k_enc, (B, P, E), jnp.float32)
    decoder_hidden = jax.random.normal(k_dec, (B, D), jnp.float32)
    params = make_params(k_par, E, D, A)

    ctx, alpha = visual_attention(encoder_features, decoder_hidden, params)
    jax.block_until_ready((ctx, alpha))

    ctx_ref, alpha_ref = visual_attention_ref(encoder_features, decoder_hidden, params)
    # bf16 MXU inputs (default) + approx reciprocal -> ~1e-2-level tolerance.
    np.testing.assert_allclose(np.asarray(alpha), np.asarray(alpha_ref),
                               rtol=2e-2, atol=2e-2)
    np.testing.assert_allclose(np.asarray(ctx), np.asarray(ctx_ref),
                               rtol=2e-2, atol=2e-2)

    print("KERNEL_OK")
</pallas_src>

<mosaic_0001>
module attributes {stable_mosaic.version = 11 : i64} {
  func.func @_visual_attention_kernel(%arg0: i32, %arg1: memref<2x16x32xbf16, #tpu.memory_space<vmem>>, %arg2: memref<32x32xbf16, #tpu.memory_space<vmem>>, %arg3: memref<2x32xf32, #tpu.memory_space<vmem>>, %arg4: memref<1x32xf32, #tpu.memory_space<vmem>>, %arg5: memref<2x32xf32, #tpu.memory_space<vmem>>, %arg6: memref<2x16xf32, #tpu.memory_space<vmem>>) attributes {dimension_semantics = [#tpu.dimension_semantics<parallel>], iteration_bounds = array<i64: 1>, scalar_prefetch = 0 : i64, scratch_operands = 0 : i64, tpu.core_type = #tpu.core_type<tc>, window_params = [{transform_indices = @transform_0, window_bounds = array<i64: 2, 16, 32>}, {pipeline_mode = #tpu.pipeline_mode<synchronous>, transform_indices = @transform_1, window_bounds = array<i64: 32, 32>}, {transform_indices = @transform_2, window_bounds = array<i64: 2, 32>}, {pipeline_mode = #tpu.pipeline_mode<synchronous>, transform_indices = @transform_3, window_bounds = array<i64: 1, 32>}, {transform_indices = @transform_4, window_bounds = array<i64: 2, 32>}, {transform_indices = @transform_5, window_bounds = array<i64: 2, 16>}]} {
    %c0 = arith.constant 0 : index
    %c0_0 = arith.constant 0 : index
    %c0_1 = arith.constant 0 : index
    %0 = vector.load %arg1[%c0, %c0_0, %c0_1] : memref<2x16x32xbf16, #tpu.memory_space<vmem>>, vector<2x16x32xbf16>
    %1 = vector.shape_cast %0 : vector<2x16x32xbf16> to vector<32x32xbf16>
    %c0_2 = arith.constant 0 : index
    %c0_3 = arith.constant 0 : index
    %2 = vector.load %arg2[%c0_2, %c0_3] : memref<32x32xbf16, #tpu.memory_space<vmem>>, vector<32x32xbf16>
    %cst = arith.constant dense<0.000000e+00> : vector<32x32xf32>
    %3 = tpu.matmul %1, %2, %cst {dimension_numbers = #tpu.dot_dimension_numbers<[1], [0], [0], [1], [0, 0, 1, 1], [], []>} : vector<32x32xbf16>, vector<32x32xbf16>, vector<32x32xf32> -> vector<32x32xf32>
    %4 = vector.shape_cast %3 : vector<32x32xf32> to vector<2x16x32xf32>
    %c0_4 = arith.constant 0 : index
    %c0_5 = arith.constant 0 : index
    %5 = vector.load %arg3[%c0_4, %c0_5] : memref<2x32xf32, #tpu.memory_space<vmem>>, vector<2x32xf32>
    %6 = vector.shape_cast %5 : vector<2x32xf32> to vector<2x1x32xf32>
    %7 = vector.broadcast %6 : vector<2x1x32xf32> to vector<2x16x32xf32>
    %8 = arith.addf %4, %7 : vector<2x16x32xf32>
    %cst_6 = arith.constant 0.000000e+00 : f32
    %9 = vector.broadcast %cst_6 : f32 to vector<2x16x32xf32>
    %10 = arith.maximumf %8, %9 : vector<2x16x32xf32>
    %c0_7 = arith.constant 0 : index
    %c0_8 = arith.constant 0 : index
    %11 = vector.load %arg4[%c0_7, %c0_8] : memref<1x32xf32, #tpu.memory_space<vmem>>, vector<1x32xf32>
    %12 = vector.shape_cast %11 : vector<1x32xf32> to vector<1x1x32xf32>
    %13 = vector.broadcast %12 : vector<1x1x32xf32> to vector<2x16x32xf32>
    %14 = arith.mulf %10, %13 : vector<2x16x32xf32>
    %cst_9 = arith.constant dense<0.000000e+00> : vector<2x16xf32>
    %15 = vector.multi_reduction <add>, %14, %cst_9 [2] : vector<2x16x32xf32> to vector<2x16xf32>
    %16 = vector.shape_cast %15 : vector<2x16xf32> to vector<2x16x1xf32>
    %cst_10 = arith.constant dense<0xFF800000> : vector<2x1xf32>
    %17 = vector.multi_reduction <maximumf>, %16, %cst_10 [1] : vector<2x16x1xf32> to vector<2x1xf32>
    %18 = vector.shape_cast %17 : vector<2x1xf32> to vector<2x1x1xf32>
    %19 = vector.broadcast %18 : vector<2x1x1xf32> to vector<2x16x1xf32>
    %20 = arith.subf %16, %19 : vector<2x16x1xf32>
    %21 = math.exp %20 : vector<2x16x1xf32>
    %cst_11 = arith.constant dense<0.000000e+00> : vector<2x1xf32>
    %22 = vector.multi_reduction <add>, %21, %cst_11 [1] : vector<2x16x1xf32> to vector<2x1xf32>
    %23 = vector.shape_cast %22 : vector<2x1xf32> to vector<2x1x1xf32>
    %24 = tpu.reciprocal %23 {approx = true} : vector<2x1x1xf32> -> vector<2x1x1xf32>
    %25 = vector.broadcast %24 : vector<2x1x1xf32> to vector<2x16x1xf32>
    %26 = arith.mulf %21, %25 : vector<2x16x1xf32>
    %27 = arith.extf %0 : vector<2x16x32xbf16> to vector<2x16x32xf32>
    %28 = vector.broadcast %26 : vector<2x16x1xf32> to vector<2x16x32xf32>
    %29 = arith.mulf %28, %27 : vector<2x16x32xf32>
    %cst_12 = arith.constant dense<0.000000e+00> : vector<2x32xf32>
    %30 = vector.multi_reduction <add>, %29, %cst_12 [1] : vector<2x16x32xf32> to vector<2x32xf32>
    %c0_13 = arith.constant 0 : index
    %c0_14 = arith.constant 0 : index
    %31 = vector.load %arg5[%c0_13, %c0_14] : memref<2x32xf32, #tpu.memory_space<vmem>>, vector<2x32xf32>
    tpu.vector_store %arg5[%c0_13, %c0_14], %30 {strides = array<i32>} : memref<2x32xf32, #tpu.memory_space<vmem>>, vector<2x32xf32>,
    %32 = vector.shape_cast %26 : vector<2x16x1xf32> to vector<2x16xf32>
    %c0_15 = arith.constant 0 : index
    %c0_16 = arith.constant 0 : index
    %33 = vector.load %arg6[%c0_15, %c0_16] : memref<2x16xf32, #tpu.memory_space<vmem>>, vector<2x16xf32>
    tpu.vector_store %arg6[%c0_15, %c0_16], %32 {strides = array<i32>} : memref<2x16xf32, #tpu.memory_space<vmem>>, vector<2x16xf32>,
    return
  }
  func.func @transform_0(%arg0: i32) -> (i32, i32, i32) {
    %c0_i32 = arith.constant 0 : i32
    %c0_i32_0 = arith.constant 0 : i32
    %c0_i32_1 = arith.constant 0 : i32
    return %arg0, %c0_i32, %c0_i32_0 : i32, i32, i32
  }
  func.func @transform_1(%arg0: i32) -> (i32, i32) {
    %c0_i32 = arith.constant 0 : i32
    %c0_i32_0 = arith.constant 0 : i32
    %c0_i32_1 = arith.constant 0 : i32
    return %c0_i32, %c0_i32_0 : i32, i32
  }
  func.func @transform_2(%arg0: i32) -> (i32, i32) {
    %c0_i32 = arith.constant 0 : i32
    %c0_i32_0 = arith.constant 0 : i32
    return %arg0, %c0_i32 : i32, i32
  }
  func.func @transform_3(%arg0: i32) -> (i32, i32) {
    %c0_i32 = arith.constant 0 : i32
    %c0_i32_0 = arith.constant 0 : i32
    %c0_i32_1 = arith.constant 0 : i32
    return %c0_i32, %c0_i32_0 : i32, i32
  }
  func.func @transform_4(%arg0: i32) -> (i32, i32) {
    %c0_i32 = arith.constant 0 : i32
    %c0_i32_0 = arith.constant 0 : i32
    return %arg0, %c0_i32 : i32, i32
  }
  func.func @transform_5(%arg0: i32) -> (i32, i32) {
    %c0_i32 = arith.constant 0 : i32
    %c0_i32_0 = arith.constant 0 : i32
    return %arg0, %c0_i32 : i32, i32
  }
}

</mosaic_0001>

<bundles_post_ra>
// kernel: tpu_custom_call.1
= control target key start
LH: loop header
LB: loop body
LE: loop exit
PB: predicated region body
PF: predicated region fallthrough
CT: control target
= control target key end

     0   :  { %11 = vsyncpa [#allocation3], 0  ;;  %s604_s0 = inlined_call_operand.hbm [shape: bf16[2,16,32], index: 0, kind: input, shape index: {}]   ;;  %s605_s1 = inlined_call_operand.hbm [shape: bf16[32,32], index: 1, kind: input, shape index: {}]   ;;  %s606_s2 = inlined_call_operand.vmem [shape: f32[2,32], index: 2, kind: input, shape index: {}]   ;;  %s607_s3 = inlined_call_operand.vmem [shape: f32[1,32], index: 3, kind: input, shape index: {}]   ;;  %s608_s4 = inlined_call_operand.hbm [shape: f32[2,32], index: 4, kind: output, shape index: {0}]   ;;  %s609_s5 = inlined_call_operand.hbm [shape: f32[2,16], index: 5, kind: output, shape index: {1}]  }
   0x1   :  { %12 = vsyncpa [#allocation6], 0 }
   0x2   :  { %13 = vsyncpa [#allocation4], 0 }
   0x3   :  { %14 = vsyncpa [#allocation9], 0  ;;  %s481_s18 = smov [#allocation2]   ;;  %s385_s22 = scalar_lea.hbm %s604_s0, 256 }
   0x4   :  { %s20_s19 = sshll.u32 %s481_s18, 4  ;;  %p386_p0 = scmp.ne.s32.totalorder %s604_s0, %s385_s22  ;;  %s21_s19 = int_to_ptr.vmem [resolvable:$true] %s20_s19 }
   0x5   :  { %p389_p1 = scmp.lt.u32.totalorder %s385_s22, %s604_s0 }
   0x7   :  { %p391_p2 = pnand %p389_p1, %p386_p0 }
   0x9   :  { %394 = shalt.err (!%p391_p2)
}
   0xa   :  { %s395_s27 = scalar_lea.vmem %s21_s19, 256  ;;  %p400_p4 = scmp.lt.s32.totalorder %s21_s19, %s21_s19 }
   0xb   :  { %p396_p3 = scmp.ne.s32.totalorder %s21_s19, %s395_s27  ;;  %p401_p5 = scmp.lt.s32.totalorder %s395_s27, %s395_s27 }
   0xd   :  { %p402_p6 = por %p401_p5, %p400_p4 }
   0xf   :  { %p403_p7 = pnand %p402_p6, %p396_p3 }
  0x11   :  { %406 = shalt.err (!%p403_p7)
}
  0x12   :  { %s482_s28 = smov 64   ;;  %s483_s29 = smov 4  }
  0x13   :  { %26 = dma.hbm_to_vmem [thread:$0]  %s604_s0, 256, %s21_s19, [#allocation3], %s482_s28, %s482_s28, %s483_s29  }
  0x14   :  { %s484_s7 = smov [#allocation5]   ;;  %s407_s11 = scalar_lea.hbm %s605_s1, 256 }
  0x15   :  { %s32_s8 = sshll.u32 %s484_s7, 4  ;;  %p408_p8 = scmp.ne.s32.totalorder %s605_s1, %s407_s11  ;;  %s33_s8 = int_to_ptr.vmem [resolvable:$true] %s32_s8 }
  0x16   :  { %p411_p9 = scmp.lt.u32.totalorder %s407_s11, %s605_s1 }
  0x18   :  { %p413_p10 = pnand %p411_p9, %p408_p8 }
  0x1a   :  { %416 = shalt.err (!%p413_p10)
}
  0x1b   :  { %s417_s16 = scalar_lea.vmem %s33_s8, 256  ;;  %p422_p12 = scmp.lt.s32.totalorder %s33_s8, %s33_s8 }
  0x1c   :  { %p418_p11 = scmp.ne.s32.totalorder %s33_s8, %s417_s16  ;;  %p423_p13 = scmp.lt.s32.totalorder %s417_s16, %s417_s16 }
  0x1e   :  { %p424_p0 = por %p423_p13, %p422_p12 }
  0x20   :  { %p425_p1 = pnand %p424_p0, %p418_p11 }
  0x22   :  { %428 = shalt.err (!%p425_p1)
}
  0x23   :  { %38 = dma.hbm_to_vmem [thread:$0]  %s605_s1, 256, %s33_s8, [#allocation6], %s482_s28, %s482_s28, %s483_s29  }
  0x24   :  { %473 = dma.done.wait [#allocation3], 256  }
  0x25   :  { %474 = vsyncadd [#allocation3], 4294967040 }
  0x26   :  { %475 = dma.done.wait [#allocation6], 256  }
  0x27   :  { %476 = vsyncadd [#allocation6], 4294967040  ;;  %v367_v0 = vld [vmem:[#allocation5] sm:$0xff]   ;;  %v368_v1 = vld [vmem:[#allocation5 + $0x8] sm:$0xff]   ;;  %vm80_vm0 = vcmask 261120   ;;  %v149_v6 = vlaneseq  ;;  %vm295_vm1 = vcmask 130112  }
  0x28   :  { %352 = vmatprep.subr.bf16.mxu0 %v367_v0  ;;  %v542_v2 = vld [vmem:[#allocation2] sm:$0xff]   ;;  %v544_v3 = vld [vmem:[#allocation2 + $0x8] sm:$0xff]   ;;  %v485_v4 = vmov 1966171168   ;;  %vm275_vm2 = vcmask 1041409   ;;  %vm308_vm3 = vcmask 123904  }
  0x29   :  { %353 = vmatpush3.bf16.msra.mxu0 %v367_v0  ;;  %356 = vmatprep.mubr.msk.bf16.mxu0 %vm80_vm0, %v542_v2  ;;  %v147_v5 = vunpack.c.l.s4 %v485_v4  ;;  %v551_v8 = vshrl.u32 %v149_v6, 7  ;;  %v346_v9 = vld.sshfl [vmem:[%s606_s2] sm:$0x11 pattern:$0x75316420]  ;;  %s486_s2 = smov [#allocation8]  }
  0x2a   :  { %354 = vmatprep.subr.bf16.mxu0 %v368_v1  ;;  %v145_v10 = vcombine.high %v346_v9, %v346_v9  ;;  %v347_v22 = vld [vmem:[%s607_s3] ss:$0 sm:$0xff]  ;;  %s326_s3 = sshll.u32 %s486_s2, 4  ;;  %s327_s3 = int_to_ptr.vmem [resolvable:$true] %s326_s3 }
  0x2b   :  { %v148_v7 = vunpack.c.0.s8 %v147_v5  ;;  %v162_v13 = vsub.s32 0, %v551_v8  ;;  %s429_s21 = scalar_lea.vmem %s327_s3, 32  ;;  %p434_p3 = scmp.lt.s32.totalorder %s327_s3, %s327_s3 }
  0x2c   :  { %p430_p2 = scmp.ne.s32.totalorder %s327_s3, %s429_s21  ;;  %p435_p4 = scmp.lt.s32.totalorder %s429_s21, %s429_s21 }
  0x2d   :  { %355 = vmatpush3.bf16.msra.mxu0 %v368_v1  ;;  %v151_v11 = vsub.s32 %v148_v7, %v551_v8 }
  0x2e   :  { %p436_p5 = por %p435_p4, %p434_p3 }
  0x2f   :  { %v159_v12 = vrot.slane %v145_v10, %v151_v11  ;;  %v152_v14 = vrot.slane %v346_v9, %v151_v11 }
  0x30   :  { %357 = vmatmul.mubr.msk.bf16.vlgmr.msra.gmra.mrb[0].mxu0 %vm80_vm0, %v544_v3  ;;  %p437_p6 = pnand %p436_p5, %p430_p2 }
  0x31   :  { %v167_v15 = vrot.slane %v159_v12, %v162_v13  ;;  %v163_v16 = vrot.slane %v152_v14, %v162_v13 }
 0x103   :  { %v358_v17 = vpop.f32.mrb[0].mxu0 }
 0x104   :  { %v172_v18 = vadd.f32 %v358_v17, %v167_v15  ;;  %v121_v19 = vpop.f32.mrb[1].mxu0 }
 0x105   :  { %v170_v20 = vadd.f32 %v163_v16, %v121_v19  ;;  %v359_v21 = vpop.f32.mrb[2].mxu0 }
 0x106   :  { %v176_v23 = vmax.f32 %v172_v18, 0.0  ;;  %v173_v24 = vadd.f32 %v359_v21, %v167_v15  ;;  %v124_v25 = vpop.f32.mrb[3].mxu0 }
 0x107   :  { %v174_v26 = vmax.f32 %v170_v20, 0.0  ;;  %v171_v27 = vadd.f32 %v163_v16, %v124_v25  ;;  %v250_v25 = vunpack.c.h.bf16 %v544_v3 }
 0x108   :  { %v177_v28 = vmax.f32 %v173_v24, 0.0  ;;  %v187_v29 = vmul.f32 %v347_v22, %v176_v23  ;;  %v249_v24 = vunpack.c.l.bf16 %v544_v3 }
 0x109   :  { %v175_v30 = vmax.f32 %v171_v27, 0.0  ;;  %v185_v31 = vmul.f32 %v347_v22, %v174_v26 }
 0x10a   :  { %v195_v32 = vsel %vm80_vm0, %v187_v29, 0.0  ;;  %v188_v33 = vmul.f32 %v347_v22, %v177_v28  ;;  %v247_v29 = vunpack.c.l.bf16 %v542_v2 }
 0x10b   :  { %196 = vadd.xlane.f32.xlu1 %v195_v32  ;;  %v189_v34 = vsel %vm80_vm0, %v185_v31, 0.0  ;;  %v186_v35 = vmul.f32 %v347_v22, %v175_v30  ;;  %v285_v22 = vand.u32 127, %v149_v6  ;;  %v248_v30 = vunpack.c.h.bf16 %v542_v2 }
 0x10c   :  { %190 = vadd.xlane.f32.xlu0 %v189_v34  ;;  %v198_v36 = vsel %vm80_vm0, %v188_v33, 0.0 }
 0x10d   :  { %v192_v37 = vsel %vm80_vm0, %v186_v35, 0.0  ;;  %v290_v23 = vadd.s32 4294967288, %v285_v22  ;;  %v288_v27 = vsub.s32 %v285_v22, %v551_v8 }
 0x10f   :  { %199 = vadd.xlane.f32.xlu1 %v198_v36  ;;  %v293_v28 = vsub.s32 %v290_v23, %v551_v8 }
 0x110   :  { %193 = vadd.xlane.f32.xlu0 %v192_v37 }
 0x198   :  { %v197_v38 = vpop.xlane.xlu1 %196 }
 0x199   :  { %v191_v39 = vpop.xlane.xlu0 %190 }
 0x19c   :  { %v200_v40 = vpop.xlane.xlu1 %199 }
 0x19d   :  { %v208_v41 = vmax.f32 %v197_v38, %v200_v40  ;;  %v194_v42 = vpop.xlane.xlu0 %193 }
 0x19e   :  { %v201_v43 = vmax.f32 %v191_v39, %v194_v42 }
 0x19f   :  { %v209_v44 = vrot.slane %v208_v41, 4 }
 0x1a0   :  { %v202_v45 = vrot.slane %v201_v43, 4 }
 0x1a1   :  { %v210_v46 = vmax.f32 %v208_v41, %v209_v44 }
 0x1a2   :  { %v203_v47 = vmax.f32 %v201_v43, %v202_v45 }
 0x1a3   :  { %v211_v48 = vrot.slane %v210_v46, 2 }
 0x1a4   :  { %v204_v49 = vrot.slane %v203_v47, 2 }
 0x1a5   :  { %v212_v50 = vmax.f32 %v210_v46, %v211_v48 }
 0x1a6   :  { %v205_v51 = vmax.f32 %v203_v47, %v204_v49 }
 0x1a7   :  { %v213_v52 = vrot.slane %v212_v50, 1 }
 0x1a8   :  { %v206_v53 = vrot.slane %v205_v51, 1 }
 0x1a9   :  { %v214_v54 = vmax.f32 %v212_v50, %v213_v52 }
 0x1aa   :  { %v207_v55 = vmax.f32 %v205_v51, %v206_v53 }
 0x1ab   :  { %v217_v56 = vsub.f32 %v197_v38, %v214_v54  ;;  %v218_v57 = vsub.f32 %v200_v40, %v214_v54 }
 0x1ac   :  { %v215_v58 = vsub.f32 %v191_v39, %v207_v55  ;;  %v216_v59 = vsub.f32 %v194_v42, %v207_v55 }
 0x1ad   :  { %v223_v60 = vmul.f32 1.442695, %v217_v56  ;;  %v225_v61 = vmul.f32 1.442695, %v218_v57 }
 0x1ae   :  { %v219_v62 = vmul.f32 1.442695, %v215_v58  ;;  %v221_v63 = vmul.f32 1.442695, %v216_v59 }
 0x1af   :  { %373 = vpow2.f32 %v223_v60 }
 0x1b0   :  { %375 = vpow2.f32 %v225_v61 }
 0x1b1   :  { %377 = vpow2.f32 %v219_v62 }
 0x1b2   :  { %379 = vpow2.f32 %v221_v63 }
 0x1b9   :  { %v374_v0 = vpop.eup %373 }
 0x1ba   :  { %v376_v1 = vpop.eup %375 }
 0x1bb   :  { %v378_v4 = vpop.eup %377  ;;  %v234_v5 = vadd.f32 %v376_v1, %v374_v0 }
 0x1bc   :  { %v380_v7 = vpop.eup %379 }
 0x1bd   :  { %v235_v9 = vrot.slane %v234_v5, 4  ;;  %v227_v10 = vadd.f32 %v380_v7, %v378_v4 }
 0x1bf   :  { %v236_v11 = vadd.f32 %v235_v9, %v234_v5  ;;  %v228_v12 = vrot.slane %v227_v10, 4 }
 0x1c1   :  { %v237_v13 = vrot.slane %v236_v11, 2  ;;  %v229_v14 = vadd.f32 %v228_v12, %v227_v10 }
 0x1c3   :  { %v238_v15 = vadd.f32 %v237_v13, %v236_v11  ;;  %v230_v16 = vrot.slane %v229_v14, 2 }
 0x1c5   :  { %v239_v17 = vrot.slane %v238_v15, 1  ;;  %v231_v18 = vadd.f32 %v230_v16, %v229_v14 }
 0x1c7   :  { %v240_v19 = vadd.f32 %v239_v17, %v238_v15  ;;  %v232_v20 = vrot.slane %v231_v18, 1 }
 0x1c9   :  { %381 = vrcp.f32 %v240_v19  ;;  %v233_v21 = vadd.f32 %v232_v20, %v231_v18 }
 0x1cb   :  { %383 = vrcp.f32 %v233_v21 }
 0x1d3   :  { %v382_v26 = vpop.eup %381 }
 0x1d4   :  { %v245_v31 = vmul.f32 %v382_v26, %v374_v0  ;;  %v246_v32 = vmul.f32 %v382_v26, %v376_v1 }
 0x1d5   :  { %v384_v33 = vpop.eup %383 }
 0x1d6   :  { %v254_v34 = vmul.f32 %v250_v25, %v246_v32  ;;  %v243_v6 = vmul.f32 %v384_v33, %v378_v4  ;;  %v244_v35 = vmul.f32 %v384_v33, %v380_v7  ;;  %v253_v36 = vmul.f32 %v249_v24, %v245_v31 }
 0x1d7   :  { %v300_v37 = vrot.slane %v245_v31, %v288_v27  ;;  %v304_v3 = vrot.slane %v246_v32, %v293_v28 }
 0x1d8   :  { %v252_v38 = vmul.f32 %v248_v30, %v244_v35  ;;  %v251_v39 = vmul.f32 %v247_v29, %v243_v6  ;;  %v264_v40 = vsel %vm80_vm0, %v253_v36, 0.0  ;;  %v265_v8 = vsel %vm80_vm0, %v254_v34, 0.0 }
 0x1d9   :  { %v266_v2 = vadd.f32 %v265_v8, %v264_v40  ;;  %v289_v41 = vrot.slane %v243_v6, %v288_v27  ;;  %v294_v42 = vrot.slane %v244_v35, %v293_v28  ;;  %v305_v43 = vsel %vm295_vm1, %v304_v3, %v300_v37 }
 0x1da   :  { %v255_v44 = vsel %vm80_vm0, %v251_v39, 0.0  ;;  %v256_v45 = vsel %vm80_vm0, %v252_v38, 0.0 }
 0x1db   :  { %v257_v46 = vadd.f32 %v256_v45, %v255_v44  ;;  %v267_v47 = vrot.slane %v266_v2, 4  ;;  %v296_v48 = vsel %vm295_vm1, %v294_v42, %v289_v41 }
 0x1dc   :  { %v306_v49 = vsel %vm275_vm2, %v305_v43, %v296_v48 }
 0x1dd   :  { %v258_v50 = vrot.slane %v257_v46, 4  ;;  %v268_v51 = vadd.f32 %v267_v47, %v266_v2  ;;  %309 = vst.msk [vmem:[#allocation8] sm:$0x3] %vm308_vm3, %v306_v49 }
 0x1de   :  { %440 = shalt.err (!%p437_p6)
}
 0x1df   :  { %s441_s24 = scalar_lea.hbm %s609_s5, 32 }
 0x1e0   :  { %p442_p7 = scmp.ne.s32.totalorder %s609_s5, %s441_s24  ;;  %p445_p8 = scmp.lt.u32.totalorder %s441_s24, %s609_s5 }
 0x1e2   :  { %p447_p9 = pnand %p445_p8, %p442_p7 }
 0x1e4   :  { %450 = shalt.err (!%p447_p9)
}
 0x1e5   :  { %329 = dma.vmem_to_hbm [thread:$0]  %s327_s3, 32, %s609_s5, [#allocation9]   ;;  %v259_v52 = vadd.f32 %v258_v50, %v257_v46  ;;  %v269_v53 = vrot.slane %v268_v51, 2  ;;  %vm278_vm4 = vcmask 254976  }
 0x1e6   :  { %s487_s6 = smov [#allocation7]  }
 0x1e7   :  { %v260_v54 = vrot.slane %v259_v52, 2  ;;  %v270_v55 = vadd.f32 %v269_v53, %v268_v51  ;;  %s316_s7 = sshll.u32 %s487_s6, 4  ;;  %s317_s7 = int_to_ptr.vmem [resolvable:$true] %s316_s7 }
 0x1e8   :  { %s451_s8 = scalar_lea.vmem %s317_s7, 32  ;;  %p456_p11 = scmp.lt.s32.totalorder %s317_s7, %s317_s7 }
 0x1e9   :  { %v261_v56 = vadd.f32 %v260_v54, %v259_v52  ;;  %v271_v57 = vrot.slane %v270_v55, 1  ;;  %p452_p10 = scmp.ne.s32.totalorder %s317_s7, %s451_s8  ;;  %p457_p12 = scmp.lt.s32.totalorder %s451_s8, %s451_s8 }
 0x1eb   :  { %v262_v58 = vrot.slane %v261_v56, 1  ;;  %v272_v59 = vadd.f32 %v271_v57, %v270_v55  ;;  %p458_p13 = por %p457_p12, %p456_p11 }
 0x1ed   :  { %v263_v60 = vadd.f32 %v262_v58, %v261_v56  ;;  %p459_p0 = pnand %p458_p13, %p452_p10 }
 0x1ef   :  { %v276_v61 = vsel %vm275_vm2, %v272_v59, %v263_v60 }
 0x1f0   :  { %279 = vst.msk [vmem:[#allocation7] sm:$0x3] %vm278_vm4, %v276_v61 }
 0x1f1   :  { %462 = shalt.err (!%p459_p0)
}
 0x1f2   :  { %s463_s10 = scalar_lea.hbm %s608_s4, 32 }
 0x1f3   :  { %p464_p1 = scmp.ne.s32.totalorder %s608_s4, %s463_s10  ;;  %p467_p2 = scmp.lt.u32.totalorder %s463_s10, %s608_s4 }
 0x1f5   :  { %p469_p3 = pnand %p467_p2, %p464_p1 }
 0x1f7   :  { %472 = shalt.err (!%p469_p3)
}
 0x1f8   :  { %319 = dma.vmem_to_hbm [thread:$0]  %s317_s7, 32, %s608_s4, [#allocation4]  }
 0x1f9   :  { %477 = dma.done.wait [#allocation4], 32  }
 0x1fa   :  { %478 = vsyncadd [#allocation4], 4294967264 }
 0x1fb   :  { %479 = dma.done.wait [#allocation9], 32  }
 0x1fc   :  { %480 = vsyncadd [#allocation9], 4294967264 }
 0x1fd   :  { %336 = vsyncpa [#allocation3], 1 }
 0x1fe   :  { %337 = vsyncpa [#allocation6], 1 }
 0x1ff   :  { %338 = vsyncpa [#allocation4], 1 }
 0x200   :  { %339 = vsyncpa [#allocation9], 1 }

</bundles_post_ra>
